<compile_context>
chip_gen: v7x
topology: tpu7x:2x2x1
jax: 0.10.0
libtpu: 0.0.40
codegen_flags: <defaults>
</compile_context>

<pallas_src>
import jax
import jax.numpy as jnp
from jax import lax
from jax.experimental import pallas as pl
from jax.experimental.pallas import tpu as pltpu

LANE = 128


def _round_up(n, m):
    return (n + m - 1) // m * m


def downsample_matmul_kernel(xcol_ref, w_ref, b_ref, o_ref):
    # xcol_ref: (1, TS, K)    bf16 im2col patch rows (9*C taps packed, zero tail)
    # w_ref:    (K, Cop)      bf16 conv weight as a matmul (tap-major, Cin fastest)
    # b_ref:    (1, Cop)      f32 bias
    # o_ref:    (1, TS, Cop)  f32 output pixels (lane-dense)
    acc = jnp.dot(xcol_ref[0], w_ref[...], preferred_element_type=jnp.float32)
    o_ref[0] = acc + b_ref[...]


def _pick_tile(S, B):
    """Spatial tile: as large as possible (HBM roofline), multiple of 8, but keep
    >=2 parallel grid points so v7x can occupy both TensorCores."""
    if S <= 8:
        return S
    ts = min(S, 1024)
    ts -= ts % 8
    if B * ((S + ts - 1) // ts) < 2:
        half = (S // 2) - (S // 2) % 8
        if half >= 8:
            ts = half
    return ts


def downsample(x_nchw, weight, bias):
    """Forward of Downsample.  x_nchw: (B, C, H, W); weight: (C, C, 3, 3); bias: (C,)."""
    B, C, H, W = x_nchw.shape
    # Output size of a 3x3 / stride-2 / no-pad conv on the (H+1, W+1) padded input.
    Ho = (H - 2) // 2 + 1
    Wo = (W - 2) // 2 + 1
    S = Ho * Wo
    Cop = _round_up(C, LANE)        # lane-dense output channels
    Kc = 9 * C                      # compact reduction: 9 taps x Cin, no per-tap pad
    K = _round_up(Kc, LANE)         # zero-pad only the tail of the reduction axis

    # ---- plain-JAX layout glue (bf16, so transpose/pad/im2col move half the bytes) ----
    x = jnp.transpose(x_nchw.astype(jnp.bfloat16), (0, 2, 3, 1))       # (B, H, W, C)
    x = jnp.pad(x, ((0, 0), (0, 1), (0, 1), (0, 0)))                   # (B, H+1, W+1, C)

    # im2col: 9 stride-2 tap slabs, channels packed tight, tail zero-padded to K.
    slabs = []
    for kh in range(3):
        for kw in range(3):
            slabs.append(x[:, kh:kh + 2 * Ho:2, kw:kw + 2 * Wo:2, :])  # (B, Ho, Wo, C)
    xcol = jnp.concatenate(slabs, axis=-1)                             # (B, Ho, Wo, 9C)
    xcol = jnp.pad(xcol, ((0, 0), (0, 0), (0, 0), (0, K - Kc)))
    xcol = xcol.reshape(B, S, K)                                       # (B, S, K) bf16

    # conv weight (Cout, Cin, 3, 3) -> (K, Cop) matmul weight, row = (kh*3+kw)*C + ci.
    w_col = jnp.transpose(weight.astype(jnp.float32), (2, 3, 1, 0)).reshape(Kc, C)
    w_col = jnp.pad(w_col, ((0, K - Kc), (0, Cop - C))).astype(jnp.bfloat16)
    b_col = jnp.zeros((1, Cop), jnp.float32).at[0, :C].set(bias.astype(jnp.float32))

    # ---- Pallas call: tile the output pixels; one wide bf16 MXU matmul per tile ----
    TS = _pick_tile(S, B)
    num_m = pl.cdiv(S, TS)

    out_flat = pl.pallas_call(
        downsample_matmul_kernel,
        out_shape=jax.ShapeDtypeStruct((B, S, Cop), jnp.float32),
        grid_spec=pltpu.PrefetchScalarGridSpec(
            num_scalar_prefetch=0,
            grid=(B, num_m),
            in_specs=[
                pl.BlockSpec((1, TS, K), lambda b, m: (b, m, 0)),   # patches
                pl.BlockSpec((K, Cop), lambda b, m: (0, 0)),        # weight (resident)
                pl.BlockSpec((1, Cop), lambda b, m: (0, 0)),        # bias   (resident)
            ],
            out_specs=pl.BlockSpec((1, TS, Cop), lambda b, m: (b, m, 0)),
        ),
        compiler_params=pltpu.CompilerParams(
            dimension_semantics=("parallel", "parallel"),
            vmem_limit_bytes=32 * 1024 * 1024,
        ),
    )(xcol, w_col, b_col)

    # (B, S, Cop) -> (B, C, Ho, Wo); slice channels before the transpose (less traffic).
    out = out_flat[:, :, :C].reshape(B, Ho, Wo, C).transpose(0, 3, 1, 2)
    return out


def ref_downsample(x, weight, bias):
    """Pure-JAX f32 reference mirroring the PyTorch forward (NCHW)."""
    out = lax.conv_general_dilated(
        x.astype(jnp.float32), weight.astype(jnp.float32),
        window_strides=(2, 2), padding=((0, 1), (0, 1)),
        dimension_numbers=("NCHW", "OIHW", "NCHW"))
    return out + bias[None, :, None, None]


if __name__ == "__main__":
    B, C, H, W = 2, 64, 16, 16
    key = jax.random.PRNGKey(0)
    kx, kw, kb = jax.random.split(key, 3)
    x = jax.random.normal(kx, (B, C, H, W), jnp.float32)
    weight = 0.05 * jax.random.normal(kw, (C, C, 3, 3), jnp.float32)
    bias = 0.1 * jax.random.normal(kb, (C,), jnp.float32)

    out = jax.block_until_ready(downsample(x, weight, bias))
    ref = jax.block_until_ready(ref_downsample(x, weight, bias))

    assert out.shape == (B, C, H // 2, W // 2), out.shape
    err = float(jnp.max(jnp.abs(out - ref)))
    # bf16 MXU operands with f32 accumulation: tolerance loosened accordingly.
    assert jnp.allclose(out, ref, atol=6e-2, rtol=6e-2), err
    print("KERNEL_OK")
</pallas_src>

<mosaic_0001>
module attributes {stable_mosaic.version = 11 : i64} {
  func.func @downsample_matmul_kernel(%arg0: i32, %arg1: i32, %arg2: memref<1x64x640xbf16, #tpu.memory_space<vmem>>, %arg3: memref<640x128xbf16, #tpu.memory_space<vmem>>, %arg4: memref<1x128xf32, #tpu.memory_space<vmem>>, %arg5: memref<1x64x128xf32, #tpu.memory_space<vmem>>) attributes {dimension_semantics = [#tpu.dimension_semantics<parallel>, #tpu.dimension_semantics<parallel>], iteration_bounds = array<i64: 2, 1>, scalar_prefetch = 0 : i64, scratch_operands = 0 : i64, tpu.core_type = #tpu.core_type<tc>, window_params = [{transform_indices = @transform_0, window_bounds = array<i64: 1, 64, 640>}, {pipeline_mode = #tpu.pipeline_mode<synchronous>, transform_indices = @transform_1, window_bounds = array<i64: 640, 128>}, {pipeline_mode = #tpu.pipeline_mode<synchronous>, transform_indices = @transform_2, window_bounds = array<i64: 1, 128>}, {transform_indices = @transform_3, window_bounds = array<i64: 1, 64, 128>}]} {
    %c0 = arith.constant 0 : index
    %c0_0 = arith.constant 0 : index
    %c0_1 = arith.constant 0 : index
    %0 = vector.load %arg2[%c0, %c0_0, %c0_1] : memref<1x64x640xbf16, #tpu.memory_space<vmem>>, vector<1x64x640xbf16>
    %1 = vector.shape_cast %0 : vector<1x64x640xbf16> to vector<64x640xbf16>
    %c0_2 = arith.constant 0 : index
    %c0_3 = arith.constant 0 : index
    %2 = vector.load %arg3[%c0_2, %c0_3] : memref<640x128xbf16, #tpu.memory_space<vmem>>, vector<640x128xbf16>
    %cst = arith.constant dense<0.000000e+00> : vector<64x128xf32>
    %3 = tpu.matmul %1, %2, %cst {dimension_numbers = #tpu.dot_dimension_numbers<[1], [0], [0], [1], [0, 0, 1, 1], [], []>} : vector<64x640xbf16>, vector<640x128xbf16>, vector<64x128xf32> -> vector<64x128xf32>
    %c0_4 = arith.constant 0 : index
    %c0_5 = arith.constant 0 : index
    %4 = vector.load %arg4[%c0_4, %c0_5] : memref<1x128xf32, #tpu.memory_space<vmem>>, vector<1x128xf32>
    %5 = vector.broadcast %4 : vector<1x128xf32> to vector<64x128xf32>
    %6 = arith.addf %3, %5 : vector<64x128xf32>
    %c0_6 = arith.constant 0 : index
    %c0_7 = arith.constant 0 : index
    %c0_8 = arith.constant 0 : index
    %7 = vector.load %arg5[%c0_6, %c0_7, %c0_8] : memref<1x64x128xf32, #tpu.memory_space<vmem>>, vector<1x64x128xf32>
    %8 = vector.shape_cast %7 : vector<1x64x128xf32> to vector<64x128xf32>
    %9 = vector.shape_cast %6 : vector<64x128xf32> to vector<1x64x128xf32>
    tpu.vector_store %arg5[%c0_6, %c0_7, %c0_8], %9 {strides = array<i32>} : memref<1x64x128xf32, #tpu.memory_space<vmem>>, vector<1x64x128xf32>,
    return
  }
  func.func @transform_0(%arg0: i32, %arg1: i32) -> (i32, i32, i32) {
    %c0_i32 = arith.constant 0 : i32
    %c0_i32_0 = arith.constant 0 : i32
    return %arg0, %arg1, %c0_i32 : i32, i32, i32
  }
  func.func @transform_1(%arg0: i32, %arg1: i32) -> (i32, i32) {
    %c0_i32 = arith.constant 0 : i32
    %c0_i32_0 = arith.constant 0 : i32
    %c0_i32_1 = arith.constant 0 : i32
    return %c0_i32, %c0_i32_0 : i32, i32
  }
  func.func @transform_2(%arg0: i32, %arg1: i32) -> (i32, i32) {
    %c0_i32 = arith.constant 0 : i32
    %c0_i32_0 = arith.constant 0 : i32
    %c0_i32_1 = arith.constant 0 : i32
    return %c0_i32, %c0_i32_0 : i32, i32
  }
  func.func @transform_3(%arg0: i32, %arg1: i32) -> (i32, i32, i32) {
    %c0_i32 = arith.constant 0 : i32
    %c0_i32_0 = arith.constant 0 : i32
    return %arg0, %arg1, %c0_i32 : i32, i32, i32
  }
}

</mosaic_0001>

<bundles_post_ra>
// kernel: tpu_custom_call.1
= control target key start
LH: loop header
LB: loop body
LE: loop exit
PB: predicated region body
PF: predicated region fallthrough
CT: control target
= control target key end

     0   :  { %8 = vsyncpa [#allocation3], 0  ;;  %s1772_s0 = inlined_call_operand.hbm [shape: bf16[2,64,640], index: 0, kind: input, shape index: {}]   ;;  %s1773_s1 = inlined_call_operand.hbm [shape: bf16[640,128], index: 1, kind: input, shape index: {}]   ;;  %s1774_s2 = inlined_call_operand.vmem [shape: f32[1,128], index: 2, kind: input, shape index: {}]   ;;  %s1775_s3 = inlined_call_operand.hbm [shape: f32[2,64,128], index: 3, kind: output, shape index: {}]  }
   0x1   :  { %10 = vsyncpa [#allocation3 + $0x1], 0 }
   0x2   :  { %11 = vsyncpa [#allocation6], 0 }
   0x3   :  { %12 = vsyncpa [#allocation4], 0 }
   0x4   :  { %14 = vsyncpa [#allocation4 + $0x1], 0  ;;  %s1530_s12 = smov 0   ;;  %s1532_s13 = smov 0  }
   0x5   :  { %s1534_s14 = smov 0   ;;  %s1536_s15 = smov 0  }
   0x6   :  { %s1538_s16 = smov 0   ;;  %s1540_s17 = smov 0  }
   0x7 LB: > { %s997_s18 = sadd.s32 4294967295, %s1499_s17   ;;  %s998_s19 = sadd.s32 4294967294, %s1499_s17   ;;  %s1499_s17 = sphi %s1540_s17, %s20_s17   ;;  %s1495_s16 = sphi %s1538_s16, %s1798_s16   ;;  %s1491_s15 = sphi %s1536_s15, %s1797_s15   ;;  %s1487_s14 = sphi %s1534_s14, %s1796_s14   ;;  %s1483_s13 = sphi %s1532_s13, %s1795_s13   ;;  %s1479_s12 = sphi %s1530_s12, %s1794_s12  }
   0x8   : > { %p54_p0 = scmp.ne.s32.totalorder %s1483_s13, %s1479_s12  ;;  %p1564_p1 = scmp.eq.s32.totalorder %s997_s18, 0 }
   0x9   : > { %p1568_p2 = scmp.eq.s32.totalorder %s997_s18, 1  ;;  %p128_p3 = scmp.eq.s32.totalorder %s998_s19, 1 }
   0xa   : > { %s1780_s20 = scalar_select %p1564_p1, 1, 0 }
   0xb   : > { %s1781_s21 = scalar_select %p1568_p2, 1, 0 }
   0xc   : > { %p1574_p4 = por %p1564_p1, %p54_p0  ;;  %p999_p5 = scmp.ge.s32.totalorder %s1499_s17, 1 }
   0xd   : > { %p1579_p6 = por %p128_p3, %p54_p0  ;;  %p135_p7 = scmp.lt.s32.totalorder %s1499_s17, 3 }
   0xe   : > { %s1782_s22 = scalar_select %p1574_p4, 1, 0 }
   0xf   : > { %s1783_s23 = scalar_select %p1579_p6, 1, 0 }
  0x10   : > { %p1584_p8 = pnand %p999_p5, %p135_p7  ;;  %s1501_s25 = smov [#allocation5]  }
  0x11   : > { %s147_s26 = sshll.u32 %s1501_s25, 4  ;;  %s32_s28 = sadd.s32 1, %s1495_s16  ;;  %s148_s26 = int_to_ptr.vmem [resolvable:$true] %s147_s26 }
  0x12   : > { %s1784_s24 = scalar_select %p1584_p8, 1, 0 }
  0x13   : > { %p1216_p9 = pneg %p1584_p8  ;;  %s1355_s4 = scalar_lea.hbm %s1773_s1, 5120 }
  0x14   : > { %p1356_p12 = scmp.ne.s32.totalorder %s1773_s1, %s1355_s4  ;;  %p1362_p5 = scmp.lt.u32.totalorder %s1355_s4, %s1773_s1 }
  0x15   : > { %p1593_p11 = pnand %p1216_p9, %p1564_p1 }
  0x17   : > { %p1357_p13 = pneg %p1593_p11 }
  0x19   : > { %p1358_p0 = pnand %p1357_p13, %p1356_p12 }
  0x1b   : > { %p1359_p3 = pneg %p1358_p0 }
  0x1d   : > { %p1364_p7 = pnand %p1362_p5, %p1359_p3 }
  0x1f   : > { %1367 = shalt.err (!%p1364_p7)
}
  0x20   : > { %s1368_s9 = scalar_lea.vmem %s148_s26, 5120  ;;  %p1376_p1 = scmp.lt.s32.totalorder %s148_s26, %s148_s26 }
  0x21   : > { %p1369_p9 = scmp.ne.s32.totalorder %s148_s26, %s1368_s9  ;;  %p1377_p4 = scmp.lt.s32.totalorder %s1368_s9, %s1368_s9 }
  0x23   : > { %p1371_p10 = pnand %p1369_p9, %p1357_p13  ;;  %p1378_p8 = por %p1377_p4, %p1376_p1 }
  0x25   : > { %p1372_p6 = pneg %p1371_p10 }
  0x27   : > { %p1379_p2 = pnand %p1378_p8, %p1372_p6 }
  0x29   : > { %1382 = shalt.err (!%p1379_p2)
}
  0x2a   : > { %s1502_s10 = smov 64   ;;  %s1503_s11 = smov 4  }
  0x2b   : > { %1219 = dma.hbm_to_vmem [thread:$0]  (!%p1593_p11), %s1773_s1, 5120, %s148_s26, [#allocation6], %s1502_s10, %s1502_s10, %s1503_s11  }
  0x2c   : > { %p34_p1 = scmp.ge.s32.totalorder %s32_s28, 2  ;;  %s41_s25 = sadd.s32 1, %s1487_s14 }
  0x2d   : > { %p48_p2 = scmp.ne.s32.totalorder %s1487_s14, %s1483_s13  ;;  %p49_p4 = scmp.eq.s32.totalorder %s1499_s17, 0 }
  0x2e   : > { %s1800_s28 = smov (%p34_p1, %s32_s28), 0  ;;  %p1786_p8 = scmp.ne.s32.totalorder %s1781_s21, 0 }
  0x2f   : > { %p50_p6 = por %p49_p4, %p48_p2  ;;  %s36_s30 = ssub.s32 %s1495_s16, %s1800_s28 }
  0x30   : > { %p1622_p10 = por %p1786_p8, %p48_p2  ;;  %p1229_p12 = scmp.lt.s32.totalorder %s1499_s17, 2 }
  0x31   : > { %p39_p13 = scmp.eq.s32.totalorder %s36_s30, 0  ;;  %s164_s27 = sand.u32 1, %s1487_s14  }
  0x32   : > { %s1205_s4 = smul.u32 160, %s164_s27  ;;  %p1634_p11 = pnand %p1229_p12, %p50_p6 }
  0x33   : > { %s1631_s5 = scalar_select %p39_p13, %s1487_s14, %s41_s25  }
  0x34   : > { %s1206_s26 = smul.u32 2560, %s1495_s16  ;;  %s168_s6 = scalar_lea.vmem [#allocation2], %s1205_s4 }
  0x35   : > { %s178_s7 = sshll.u32 %s168_s6, 4  ;;  %s1645_s11 = scalar_lea.sflag [#allocation3], %s164_s27  ;;  %s1643_s7 = int_to_ptr.vmem [resolvable:$true] %s178_s7 }
  0x36   : > { %s1641_s10 = scalar_lea.hbm %s1772_s0, %s1206_s26  ;;  %p1385_p3 = pneg %p1634_p11 }
  0x37   : > { %s1383_s18 = scalar_lea.hbm %s1641_s10, 2560  ;;  %s1388_s30 = scalar_lea.hbm %s1772_s0, 5120 }
  0x38   : > { %p1384_p0 = scmp.ne.s32.totalorder %s1641_s10, %s1383_s18  ;;  %p1389_p9 = scmp.lt.u32.totalorder %s1641_s10, %s1772_s0 }
  0x39   : > { %p1390_p1 = scmp.lt.u32.totalorder %s1388_s30, %s1383_s18  ;;  %p1392_p4 = scmp.lt.u32.totalorder %s1383_s18, %s1641_s10 }
  0x3a   : > { %p1386_p5 = pnand %p1385_p3, %p1384_p0 }
  0x3b   : > { %p1391_p2 = por %p1390_p1, %p1389_p9 }
  0x3c   : > { %p1387_p7 = pneg %p1386_p5 }
  0x3d   : > { %p1393_p6 = por %p1392_p4, %p1391_p2 }
  0x3f   : > { %p1394_p8 = pnand %p1393_p6, %p1387_p7 }
  0x41   : > { %1397 = shalt.err (!%p1394_p8)
}
  0x42   : > { %s1398_s27 = scalar_lea.vmem %s1643_s7, 2560  ;;  %s1504_s6 = smov [#allocation2]  }
  0x43   : > { %p1399_p12 = scmp.ne.s32.totalorder %s1643_s7, %s1398_s27  ;;  %s1403_s9 = sshll.u32 %s1504_s6, 4  ;;  %s1404_s9 = int_to_ptr.vmem [resolvable:$false] %s1403_s9 }
  0x44   : > { %s1405_s21 = scalar_lea.vmem %s1404_s9, 5120  ;;  %p1406_p5 = scmp.lt.s32.totalorder %s1643_s7, %s1404_s9 }
  0x45   : > { %p1401_p13 = pnand %p1399_p12, %p1385_p3  ;;  %p1407_p9 = scmp.lt.s32.totalorder %s1405_s21, %s1398_s27 }
  0x47   : > { %p1402_p0 = pneg %p1401_p13  ;;  %p1408_p1 = por %p1407_p9, %p1406_p5 }
  0x49   : > { %p1409_p2 = pnand %p1408_p1, %p1402_p0 }
  0x4b   : > { %1412 = shalt.err (!%p1409_p2)
}
  0x4c   : > { %s1505_s18 = smov 320   ;;  %s1506_s19 = smov 20  }
  0x4d   : > { %1223 = dma.hbm_to_vmem [thread:$0]  (!%p1634_p11), %s1641_s10, 2560, %s1643_s7, %s1645_s11, %s1505_s18, %s1505_s18, %s1506_s19  }
  0x4e   : > { %p1789_p3 = scmp.ne.s32.totalorder %s1784_s24, 0 }
  0x4f   : > { %s1676_s25 = sand.u32 (!%p1789_p3), 1, %s1483_s13   ;;  %p1790_p7 = scmp.ne.s32.totalorder (!%p1789_p3), %s1782_s22, 0 }
  0x50   : > { %190 = sbr.rel (%p1789_p3) target bundleno = 391 (0x187), region = 32  ;;  %s193_s4 = scalar_lea.sflag (!%p1789_p3), [#allocation3], %s1676_s25 }
  0x51   : > { %s1207_s30 = smul.u32 (!%p1789_p3), 160, %s1676_s25 }
  0x53   : > { %s1680_s26 = scalar_lea.vmem (!%p1789_p3), [#allocation2], %s1207_s30 }
  0x57   : > { %1466 = dma.done.wait (%p1790_p7), %s193_s4, 2560  }
  0x58   : > { %1468 = vsyncadd (%p1790_p7), %s193_s4, 4294964736  ;;  %p1791_p11 = scmp.ne.s32.totalorder %s1780_s20, 0 }
  0x5a   : > { %1470 = dma.done.wait (%p1791_p11), [#allocation6], 5120  }
  0x5b   : > { %1472 = vsyncadd (%p1791_p11), [#allocation6], 4294962176  ;;  %v1287_v0 = vld [vmem:[#allocation5 + $0x40] sm:$0xff]   ;;  %v1291_v4 = vld [vmem:[#allocation5 + $0x48] sm:$0xff]   ;;  %s1005_s24 = sshll.u32 %s1676_s25, 6  ;;  %s1072_s10 = sshll.u32 %s1491_s15, 10 }
  0x5c   : > { %v1288_v1 = vld [vmem:[#allocation5 + $0xc0] sm:$0xff]   ;;  %1073 = vmatprep.subr.bf16.mxu0 %v1287_v0  ;;  %v1292_v5 = vld [vmem:[#allocation5 + $0xc8] sm:$0xff]   ;;  %v1295_v8 = vld [vmem:[#allocation5 + $0x50] sm:$0xff]   ;;  %s222_s7 = scalar_lea.vmem [#allocation7], %s1005_s24  ;;  %s1723_s27 = scalar_lea.hbm %s1775_s3, %s1072_s10 }
  0x5d   : > { %v1289_v2 = vld [vmem:[#allocation5] sm:$0xff]   ;;  %1113 = vmatprep.subr.bf16.mxu1 %v1288_v1  ;;  %v1293_v6 = vld [vmem:[#allocation5 + $0x8] sm:$0xff]   ;;  %v1296_v9 = vld [vmem:[#allocation5 + $0xd0] sm:$0xff]   ;;  %s900_s8 = sshll.u32 %s222_s7, 4  ;;  %s885_s6 = scalar_lea.sflag [#allocation4], %s1676_s25  ;;  %s1717_s8 = int_to_ptr.vmem [resolvable:$true] %s900_s8 }
  0x5e   : > { %v1290_v3 = vld [vmem:[#allocation5 + $0x80] sm:$0xff]   ;;  %1074 = vmatpush3.bf16.msra.mxu0 %v1289_v2  ;;  %v1294_v7 = vld [vmem:[#allocation5 + $0x88] sm:$0xff]   ;;  %v1297_v10 = vld [vmem:[#allocation5 + $0x10] sm:$0xff]   ;;  %s1413_s9 = scalar_lea.vmem %s1717_s8, 1024  ;;  %s1507_s21 = smov [#allocation7]  }
  0x5f   : > { %1114 = vmatpush3.bf16.msra.mxu1 %v1290_v3  ;;  %1075 = vmatprep.subr.bf16.mxu0 %v1291_v4  ;;  %v1298_v11 = vld [vmem:[#allocation5 + $0x90] sm:$0xff]   ;;  %v1299_v12 = vld [vmem:[#allocation5 + $0x58] sm:$0xff]   ;;  %v1303_v16 = vld [vmem:[#allocation5 + $0x60] sm:$0xff]   ;;  %p1414_p4 = scmp.ne.s32.totalorder %s1717_s8, %s1413_s9  ;;  %s1417_s18 = sshll.u32 %s1507_s21, 4  ;;  %s1418_s18 = int_to_ptr.vmem [resolvable:$false] %s1417_s18 }
  0x60   : > { %1115 = vmatprep.subr.bf16.mxu1 %v1292_v5  ;;  %v1300_v13 = vld [vmem:[#allocation5 + $0xd8] sm:$0xff]   ;;  %v1304_v17 = vld [vmem:[#allocation5 + $0xe0] sm:$0xff]   ;;  %v1307_v20 = vld [vmem:[#allocation5 + $0x68] sm:$0xff]   ;;  %s1419_s19 = scalar_lea.vmem %s1418_s18, 2048  ;;  %p1420_p12 = scmp.lt.s32.totalorder %s1717_s8, %s1418_s18 }
  0x61   : > { %v1301_v14 = vld [vmem:[#allocation5 + $0x18] sm:$0xff]   ;;  %v1305_v18 = vld [vmem:[#allocation5 + $0x20] sm:$0xff]   ;;  %v1308_v21 = vld [vmem:[#allocation5 + $0xe8] sm:$0xff]   ;;  %p1415_p6 = pnand %p1414_p4, %p1622_p10  ;;  %p1421_p13 = scmp.lt.s32.totalorder %s1419_s19, %s1413_s9 }
  0x62   : > { %1076 = vmatpush3.bf16.msra.mxu0 %v1293_v6  ;;  %v1302_v15 = vld [vmem:[#allocation5 + $0x98] sm:$0xff]   ;;  %v1306_v19 = vld [vmem:[#allocation5 + $0xa0] sm:$0xff]   ;;  %v1309_v22 = vld [vmem:[#allocation5 + $0x28] sm:$0xff]  }
  0x63   : > { %1116 = vmatpush3.bf16.msra.mxu1 %v1294_v7  ;;  %1077 = vmatprep.subr.bf16.mxu0 %v1295_v8  ;;  %v1310_v23 = vld [vmem:[#allocation5 + $0xa8] sm:$0xff]   ;;  %v1311_v24 = vld [vmem:[#allocation5 + $0x70] sm:$0xff]   ;;  %v1315_v28 = vld [vmem:[#allocation5 + $0x78] sm:$0xff]   ;;  %p1416_p8 = pneg %p1415_p6  ;;  %p1422_p0 = por %p1421_p13, %p1420_p12 }
  0x64   : > { %1117 = vmatprep.subr.bf16.mxu1 %v1296_v9  ;;  %v1312_v25 = vld [vmem:[#allocation5 + $0xf0] sm:$0xff]   ;;  %v1316_v29 = vld [vmem:[#allocation5 + $0xf8] sm:$0xff]   ;;  %v1324_v35 = vld [vmem:[%s1680_s26 + $0xc] ss:$20 sps:$4 sm:$0xff]  }
  0x65   : > { %v1313_v26 = vld [vmem:[#allocation5 + $0x30] sm:$0xff]   ;;  %v1317_v30 = vld [vmem:[#allocation5 + $0x38] sm:$0xff]   ;;  %v1325_v36 = vld [vmem:[#allocation5 + $0x100] sm:$0xff]   ;;  %778 = vmatprep.mubr.bf16.mxu1 %v1324_v35  ;;  %p1423_p5 = pnand %p1422_p0, %p1416_p8 }
  0x66   : > { %1078 = vmatpush3.bf16.msra.mxu0 %v1297_v10  ;;  %v1314_v27 = vld [vmem:[#allocation5 + $0xb0] sm:$0xff]   ;;  %v1318_v31 = vld [vmem:[#allocation5 + $0xb8] sm:$0xff]   ;;  %v1326_v37 = vld [vmem:[#allocation5 + $0x108] sm:$0xff]  }
  0x67   : > { %1118 = vmatpush3.bf16.msra.mxu1 %v1298_v11  ;;  %1079 = vmatprep.subr.bf16.mxu0 %v1299_v12  ;;  %v1319_v32 = vld [vmem:[%s1680_s26] ss:$20 sps:$4 sm:$0xff]   ;;  %v1321_v33 = vld [vmem:[%s1680_s26 + $0x4] ss:$20 sps:$4 sm:$0xff]   ;;  %v1322_v34 = vld [vmem:[%s1680_s26 + $0x8] ss:$20 sps:$4 sm:$0xff]  }
  0x68   : > { %1119 = vmatprep.subr.bf16.mxu1 %v1300_v13  ;;  %713 = vmatprep.mubr.bf16.mxu0 %v1321_v33  ;;  %v1327_v38 = vld [vmem:[%s1680_s26 + $0x2c] ss:$20 sps:$4 sm:$0xff]   ;;  %v1329_v39 = vld [vmem:[%s1680_s26 + $0x34] ss:$20 sps:$4 sm:$0xff]   ;;  %v1332_v42 = vld [vmem:[%s1680_s26 + $0x30] ss:$20 sps:$4 sm:$0xff]  }
  0x69   : > { %v1331_v40 = vld [vmem:[%s1680_s26 + $0x28] ss:$20 sps:$4 sm:$0xff]   ;;  %v1333_v41 = vld [vmem:[#allocation5 + $0x110] sm:$0xff]   ;;  %v1341_v46 = vld [vmem:[#allocation5 + $0x120] sm:$0xff]  }
  0x6a   : > { %1080 = vmatpush3.bf16.msra.mxu0 %v1301_v14  ;;  %v1335_v43 = vld [vmem:[%s1680_s26 + $0x54] ss:$20 sps:$4 sm:$0xff]   ;;  %v1334_v44 = vld [vmem:[#allocation5 + $0x118] sm:$0xff]   ;;  %v1339_v47 = vld [vmem:[%s1680_s26 + $0x50] ss:$20 sps:$4 sm:$0xff]  }
  0x6b   : > { %1120 = vmatpush3.bf16.msra.mxu1 %v1302_v15  ;;  %1081 = vmatprep.subr.bf16.mxu0 %v1303_v16  ;;  %v1337_v45 = vld [vmem:[%s1680_s26 + $0x5c] ss:$20 sps:$4 sm:$0xff]   ;;  %v1340_v48 = vld [vmem:[%s1680_s26 + $0x58] ss:$20 sps:$4 sm:$0xff]   ;;  %v1348_v54 = vld [vmem:[%s1680_s26 + $0x80] ss:$20 sps:$4 sm:$0xff]  }
  0x6c   : > { %1121 = vmatprep.subr.bf16.mxu1 %v1304_v17  ;;  %v1343_v49 = vld [vmem:[%s1680_s26 + $0x7c] ss:$20 sps:$4 sm:$0xff]   ;;  %v1345_v50 = vld [vmem:[%s1680_s26 + $0x84] ss:$20 sps:$4 sm:$0xff]   ;;  %v1342_v51 = vld [vmem:[#allocation5 + $0x128] sm:$0xff]  }
  0x6d   : > { %v1349_v52 = vld [vmem:[#allocation5 + $0x130] sm:$0xff]   ;;  %v1347_v53 = vld [vmem:[%s1680_s26 + $0x78] ss:$20 sps:$4 sm:$0xff]   ;;  %v1354_v59 = vld [vmem:[%s1680_s26 + $0x88] ss:$20 sps:$4 sm:$0xff]  }
  0x6e   : > { %1082 = vmatpush3.bf16.msra.mxu0 %v1305_v18  ;;  %v1351_v55 = vld [vmem:[%s1680_s26 + $0x10] ss:$20 sps:$4 sm:$0xff]   ;;  %v1352_v56 = vld [vmem:[%s1680_s26 + $0x60] ss:$20 sps:$4 sm:$0xff]   ;;  %v1350_v57 = vld [vmem:[#allocation5 + $0x138] sm:$0xff]  }
  0x6f   : > { %1122 = vmatpush3.bf16.msra.mxu1 %v1306_v19  ;;  %1083 = vmatprep.subr.bf16.mxu0 %v1307_v20  ;;  %v1353_v58 = vld [vmem:[%s1680_s26 + $0x38] ss:$20 sps:$4 sm:$0xff]   ;;  %v1006_v62 = vld [vmem:[%s1774_s2] ss:$0 sm:$0xff] }
  0x70   : > { %1123 = vmatprep.subr.bf16.mxu1 %v1308_v21 }
  0x72   : > { %1084 = vmatpush3.bf16.msra.mxu0 %v1309_v22 }
  0x73   : > { %1124 = vmatpush3.bf16.msra.mxu1 %v1310_v23  ;;  %1085 = vmatprep.subr.bf16.mxu0 %v1311_v24 }
  0x74   : > { %1125 = vmatprep.subr.bf16.mxu1 %v1312_v25 }
  0x76   : > { %1086 = vmatpush3.bf16.msra.mxu0 %v1313_v26 }
  0x77   : > { %1126 = vmatpush3.bf16.msra.mxu1 %v1314_v27  ;;  %1087 = vmatprep.subr.bf16.mxu0 %v1315_v28 }
  0x78   : > { %1127 = vmatprep.subr.bf16.mxu1 %v1316_v29 }
  0x7a   : > { %1088 = vmatpush3.bf16.msra.mxu0 %v1317_v30 }
  0x7b   : > { %1128 = vmatpush3.bf16.msra.mxu1 %v1318_v31  ;;  %1165 = vmatprep.subr.bf16.mxu0 %v1325_v36 }
  0x7c   : > { %1189 = vmatprep.subr.bf16.mxu1 %v1325_v36 }
  0x7d   : > { %714 = vmatmul.mubr.bf16.vlgmr.msra.gmra.mrb[0].mxu0 %v1319_v32 }
  0x7e   : > { %779 = vmatmul.mubr.bf16.vlgmr.msra.gmra.mrb[0].mxu1 %v1322_v34  ;;  %1166 = vmatpush3.bf16.msra.mxu0 %v1325_v36 }
  0x7f   : > { %1197 = vmatpush3.bf16.msra.mxu1 %v1325_v36  ;;  %1167 = vmatprep.subr.bf16.mxu0 %v1326_v37 }
  0x80   : > { %1190 = vmatprep.subr.bf16.mxu1 %v1326_v37  ;;  %721 = vmatprep.mubr.bf16.mxu0 %v1327_v38 }
  0x81   : > { %786 = vmatprep.mubr.bf16.mxu1 %v1329_v39 }
  0x82   : > { %1168 = vmatpush3.bf16.msra.mxu0 %v1326_v37 }
  0x83   : > { %1198 = vmatpush3.bf16.msra.mxu1 %v1326_v37  ;;  %1169 = vmatprep.subr.bf16.mxu0 %v1333_v41 }
  0x84   : > { %1191 = vmatprep.subr.bf16.mxu1 %v1333_v41 }
  0x85   : > { %722 = vmatmul.mubr.bf16.gmra.mrb[4].mxu0 %v1331_v40 }
  0x86   : > { %787 = vmatmul.mubr.bf16.gmra.mrb[4].mxu1 %v1332_v42  ;;  %729 = vmatprep.mubr.bf16.mxu0 %v1335_v43 }
  0x87   : > { %1170 = vmatpush3.bf16.msra.mxu0 %v1333_v41  ;;  %794 = vmatprep.mubr.bf16.mxu1 %v1337_v45 }
  0x88   : > { %1199 = vmatpush3.bf16.msra.mxu1 %v1333_v41  ;;  %1171 = vmatprep.subr.bf16.mxu0 %v1334_v44 }
  0x89   : > { %1192 = vmatprep.subr.bf16.mxu1 %v1334_v44 }
  0x8b   : > { %1172 = vmatpush3.bf16.msra.mxu0 %v1334_v44 }
  0x8c   : > { %1200 = vmatpush3.bf16.msra.mxu1 %v1334_v44  ;;  %1173 = vmatprep.subr.bf16.mxu0 %v1341_v46 }
  0x8d   : > { %730 = vmatmul.mubr.bf16.gmra.mrb[8].mxu0 %v1339_v47  ;;  %1193 = vmatprep.subr.bf16.mxu1 %v1341_v46 }
  0x8e   : > { %795 = vmatmul.mubr.bf16.gmra.mrb[8].mxu1 %v1340_v48  ;;  %737 = vmatprep.mubr.bf16.mxu0 %v1343_v49 }
  0x8f   : > { %1174 = vmatpush3.bf16.msra.mxu0 %v1341_v46  ;;  %802 = vmatprep.mubr.bf16.mxu1 %v1345_v50 }
  0x90   : > { %1201 = vmatpush3.bf16.msra.mxu1 %v1341_v46  ;;  %1175 = vmatprep.subr.bf16.mxu0 %v1342_v51 }
  0x91   : > { %1194 = vmatprep.subr.bf16.mxu1 %v1342_v51 }
  0x93   : > { %1176 = vmatpush3.bf16.msra.mxu0 %v1342_v51 }
  0x94   : > { %1202 = vmatpush3.bf16.msra.mxu1 %v1342_v51  ;;  %1177 = vmatprep.subr.bf16.mxu0 %v1349_v52 }
  0x95   : > { %738 = vmatmul.mubr.bf16.gmra.mrb[12].mxu0 %v1347_v53  ;;  %1195 = vmatprep.subr.bf16.mxu1 %v1349_v52 }
  0x96   : > { %803 = vmatmul.mubr.bf16.gmra.mrb[12].mxu1 %v1348_v54  ;;  %1181 = vmatprep.mubr.bf16.mxu0 %v1351_v55 }
  0x97   : > { %1178 = vmatpush3.bf16.msra.mxu0 %v1349_v52  ;;  %1185 = vmatprep.mubr.bf16.mxu1 %v1352_v56 }
  0x98   : > { %1203 = vmatpush3.bf16.msra.mxu1 %v1349_v52  ;;  %1179 = vmatprep.subr.bf16.mxu0 %v1350_v57 }
  0x99   : > { %1196 = vmatprep.subr.bf16.mxu1 %v1350_v57 }
  0x9b   : > { %1180 = vmatpush3.bf16.msra.mxu0 %v1350_v57 }
  0x9c   : > { %1204 = vmatpush3.bf16.msra.mxu1 %v1350_v57 }
  0x9e   : > { %1182 = vmatmul.mubr.bf16.vlgmr.msra.gmra.mrb[16].mxu0 %v1353_v58 }
  0x9f   : > { %1186 = vmatmul.mubr.bf16.vlgmr.msra.gmra.mrb[16].mxu1 %v1354_v59 }
 0x150   : > { %v1089_v60 = vpop.f32.mrb[0].mxu0 }
 0x151   : > { %v1129_v61 = vpop.f32.mrb[0].mxu1  ;;  %v1090_v63 = vpop.f32.mrb[1].mxu0 }
 0x152   : > { %v1091_v0 = vadd.f32 %v1090_v63, %v1089_v60  ;;  %v1130_v1 = vpop.f32.mrb[1].mxu1  ;;  %v1092_v2 = vpop.f32.mrb[2].mxu0 }
 0x153   : > { %v1131_v3 = vadd.f32 %v1130_v1, %v1129_v61  ;;  %v1132_v4 = vpop.f32.mrb[2].mxu1  ;;  %v1093_v5 = vpop.f32.mrb[3].mxu0 }
 0x154   : > { %v716_v6 = vadd.f32 %v1091_v0, %v1006_v62  ;;  %v1094_v7 = vadd.f32 %v1093_v5, %v1092_v2  ;;  %v1133_v8 = vpop.f32.mrb[3].mxu1 }
 0x155   : > { %v1134_v9 = vadd.f32 %v1133_v8, %v1132_v4 }
 0x156   : > { %v719_v10 = vadd.f32 %v1094_v7, %v1006_v62  ;;  %v781_v11 = vadd.f32 %v1131_v3, %v716_v6 }
 0x158   : > { %v1095_v12 = vpop.f32.mrb[4].mxu0  ;;  %v1713_v13 = vadd.f32 %v1134_v9, %v719_v10 }
 0x159   : > { %v1135_v14 = vpop.f32.mrb[4].mxu1  ;;  %v1096_v15 = vpop.f32.mrb[5].mxu0 }
 0x15a   : > { %v1097_v16 = vadd.f32 %v1096_v15, %v1095_v12  ;;  %v1136_v17 = vpop.f32.mrb[5].mxu1  ;;  %v1098_v18 = vpop.f32.mrb[6].mxu0 }
 0x15b   : > { %v1137_v19 = vadd.f32 %v1136_v17, %v1135_v14  ;;  %v1138_v20 = vpop.f32.mrb[6].mxu1  ;;  %v1099_v21 = vpop.f32.mrb[7].mxu0 }
 0x15c   : > { %v724_v22 = vadd.f32 %v1097_v16, %v1006_v62  ;;  %v1100_v23 = vadd.f32 %v1099_v21, %v1098_v18  ;;  %v1139_v24 = vpop.f32.mrb[7].mxu1 }
 0x15d   : > { %v1140_v25 = vadd.f32 %v1139_v24, %v1138_v20 }
 0x15e   : > { %v727_v26 = vadd.f32 %v1100_v23, %v1006_v62  ;;  %v789_v27 = vadd.f32 %v1137_v19, %v724_v22 }
 0x160   : > { %v1101_v28 = vpop.f32.mrb[8].mxu0  ;;  %v792_v29 = vadd.f32 %v1140_v25, %v727_v26 }
 0x161   : > { %v1141_v30 = vpop.f32.mrb[8].mxu1  ;;  %v1102_v31 = vpop.f32.mrb[9].mxu0 }
 0x162   : > { %v1103_v32 = vadd.f32 %v1102_v31, %v1101_v28  ;;  %v1142_v33 = vpop.f32.mrb[9].mxu1  ;;  %v1104_v34 = vpop.f32.mrb[10].mxu0 }
 0x163   : > { %v1143_v35 = vadd.f32 %v1142_v33, %v1141_v30  ;;  %v1144_v36 = vpop.f32.mrb[10].mxu1  ;;  %v1105_v37 = vpop.f32.mrb[11].mxu0 }
 0x164   : > { %v732_v38 = vadd.f32 %v1103_v32, %v1006_v62  ;;  %v1106_v39 = vadd.f32 %v1105_v37, %v1104_v34  ;;  %v1145_v40 = vpop.f32.mrb[11].mxu1 }
 0x165   : > { %v1146_v41 = vadd.f32 %v1145_v40, %v1144_v36 }
 0x166   : > { %v735_v42 = vadd.f32 %v1106_v39, %v1006_v62  ;;  %v797_v43 = vadd.f32 %v1143_v35, %v732_v38 }
 0x168   : > { %v1107_v44 = vpop.f32.mrb[12].mxu0  ;;  %v800_v45 = vadd.f32 %v1146_v41, %v735_v42 }
 0x169   : > { %v1147_v46 = vpop.f32.mrb[12].mxu1  ;;  %v1108_v47 = vpop.f32.mrb[13].mxu0 }
 0x16a   : > { %v1109_v48 = vadd.f32 %v1108_v47, %v1107_v44  ;;  %v1148_v49 = vpop.f32.mrb[13].mxu1  ;;  %v1110_v50 = vpop.f32.mrb[14].mxu0 }
 0x16b   : > { %v1149_v51 = vadd.f32 %v1148_v49, %v1147_v46  ;;  %v1150_v52 = vpop.f32.mrb[14].mxu1  ;;  %v1111_v53 = vpop.f32.mrb[15].mxu0 }
 0x16c   : > { %v740_v54 = vadd.f32 %v1109_v48, %v1006_v62  ;;  %v1112_v55 = vadd.f32 %v1111_v53, %v1110_v50  ;;  %v1151_v56 = vpop.f32.mrb[15].mxu1 }
 0x16d   : > { %v1152_v57 = vadd.f32 %v1151_v56, %v1150_v52 }
 0x16e   : > { %v743_v58 = vadd.f32 %v1112_v55, %v1006_v62  ;;  %v805_v59 = vadd.f32 %v1149_v51, %v740_v54 }
 0x170   : > { %v808_v60 = vadd.f32 %v1152_v57, %v743_v58 }
 0x171   : > { %v1183_v61 = vpop.f32.mrb[16].mxu0 }
 0x172   : > { %v854_v63 = vadd.f32 %v1183_v61, %v789_v27  ;;  %v1187_v0 = vpop.f32.mrb[16].mxu1  ;;  %v845_v1 = vpop.f32.mrb[17].mxu0 }
 0x173   : > { %v870_v2 = vadd.f32 %v1187_v0, %v805_v59  ;;  %v846_v3 = vadd.f32 %v845_v1, %v781_v11  ;;  %v861_v4 = vpop.f32.mrb[17].mxu1  ;;  %v1184_v5 = vpop.f32.mrb[18].mxu0 }
 0x174   : > { %878 = vst [vmem:[%s222_s7 + $0x10] sm:$0xff] %v854_v63  ;;  %v862_v6 = vadd.f32 %v861_v4, %v797_v43  ;;  %v857_v7 = vadd.f32 %v1184_v5, %v792_v29  ;;  %v1188_v62 = vpop.f32.mrb[18].mxu1  ;;  %v848_v8 = vpop.f32.mrb[19].mxu0 }
 0x175   : > { %882 = vst [vmem:[%s222_s7 + $0x30] sm:$0xff] %v870_v2  ;;  %876 = vst [vmem:[%s222_s7] sm:$0xff] %v846_v3  ;;  %v873_v9 = vadd.f32 %v1188_v62, %v808_v60  ;;  %v849_v10 = vadd.f32 %v848_v8, %v1713_v13  ;;  %v864_v12 = vpop.f32.mrb[19].mxu1 }
 0x176   : > { %880 = vst [vmem:[%s222_s7 + $0x20] sm:$0xff] %v862_v6  ;;  %879 = vst [vmem:[%s222_s7 + $0x18] sm:$0xff] %v857_v7  ;;  %v865_v11 = vadd.f32 %v864_v12, %v800_v45 }
 0x177   : > { %883 = vst [vmem:[%s222_s7 + $0x38] sm:$0xff] %v873_v9  ;;  %877 = vst [vmem:[%s222_s7 + $0x8] sm:$0xff] %v849_v10 }
 0x178   : > { %881 = vst [vmem:[%s222_s7 + $0x28] sm:$0xff] %v865_v11 }
 0x179   : > { %1426 = shalt.err (!%p1423_p5)
}
 0x17a   : > { %s1427_s30 = scalar_lea.hbm %s1723_s27, 1024  ;;  %s1431_s20 = scalar_lea.hbm %s1775_s3, 2048 }
 0x17b   : > { %p1428_p9 = scmp.ne.s32.totalorder %s1723_s27, %s1427_s30  ;;  %p1432_p3 = scmp.lt.u32.totalorder %s1723_s27, %s1775_s3 }
 0x17c   : > { %p1433_p7 = scmp.lt.u32.totalorder %s1431_s20, %s1427_s30  ;;  %p1435_p4 = scmp.lt.u32.totalorder %s1427_s30, %s1723_s27 }
 0x17d   : > { %p1429_p1 = pnand %p1428_p9, %p1622_p10 }
 0x17e   : > { %p1434_p11 = por %p1433_p7, %p1432_p3 }
 0x17f   : > { %p1430_p2 = pneg %p1429_p1 }
 0x180   : > { %p1436_p6 = por %p1435_p4, %p1434_p11 }
 0x182   : > { %p1437_p8 = pnand %p1436_p6, %p1430_p2 }
 0x184   : > { %1440 = shalt.err (!%p1437_p8)
}
 0x185   : > { %s1508_s7 = smov 128   ;;  %s1509_s10 = smov 8  }
 0x186   : > { %1214 = dma.vmem_to_hbm [thread:$0]  (%p1622_p10), %s1717_s8, 1024, %s1723_s27, %s885_s6, %s1508_s7, %s1508_s7, %s1509_s10  }
 0x187 PF: > { %s915_s15 = sand.u32 1, %s1479_s12   ;;  %p1792_p12 = scmp.ne.s32.totalorder %s1783_s23, 0 }
 0x188   : > { %p1793_p13 = scmp.ge.s32.totalorder %s1499_s17, 2  ;;  %s916_s11 = scalar_lea.sflag [#allocation4], %s915_s15 }
 0x18a   : > { %p1225_p0 = pnand %p1793_p13, %p1792_p12 }
 0x18c   : > { %1474 = dma.done.wait (!%p1225_p0), %s916_s11, 1024  }
 0x18d   : > { %1476 = vsyncadd (!%p1225_p0), %s916_s11, 4294966272  ;;  %s20_s17 = sadd.s32 1, %s1499_s17   ;;  %s1794_s12 = smov %s1483_s13 }
 0x18e   : > { %p17_p5 = scmp.ge.s32.totalorder %s20_s17, 4   ;;  %s1795_s13 = smov %s1487_s14 }
 0x18f   : > { %s1796_s14 = smov %s1631_s5  ;;  %s1797_s15 = smov %s1495_s16 }
 0x190   : > { %s1798_s16 = smov %s1800_s28  ;;  %19 = sbr.rel (!%p17_p5) target bundleno = 7 (0x7), region = 81 }
 0x197   :  { %921 = vsyncpa [#allocation3], 1 }
 0x198   :  { %923 = vsyncpa [#allocation3 + $0x1], 1 }
 0x199   :  { %924 = vsyncpa [#allocation6], 1 }
 0x19a   :  { %925 = vsyncpa [#allocation4], 1 }
 0x19b   :  { %927 = vsyncpa [#allocation4 + $0x1], 1 }

</bundles_post_ra>
